<compile_context>
chip_gen: v6e
topology: v6e:2x2x1
jax: 0.10.0
libtpu: 0.0.40
codegen_flags: <defaults>
</compile_context>

<pallas_src>
import jax
import jax.numpy as jnp
from jax.experimental import pallas as pl
from jax.experimental.pallas import tpu as pltpu

LANE = 128  # TPU lane width; pad final output dim to this for unmasked stores


def deepq_kernel(x_ref,
                 w1_ref, b1_ref,
                 w2_ref, b2_ref,
                 w3_ref, b3_ref,
                 w4_ref, b4_ref,
                 w5_ref, b5_ref,
                 o_ref):
    def layer(h_f32, w_ref, b_ref):
        # bf16 operands on the MXU, f32 accumulation, f32 bias add.
        return jnp.dot(h_f32.astype(jnp.bfloat16), w_ref[...],
                       preferred_element_type=jnp.float32) + b_ref[...]

    h = layer(x_ref[...], w1_ref, b1_ref)
    h = jnp.maximum(h, 0.0)
    h = layer(h, w2_ref, b2_ref)
    h = jnp.maximum(h, 0.0)
    h = layer(h, w3_ref, b3_ref)
    h = jnp.maximum(h, 0.0)
    h = layer(h, w4_ref, b4_ref)
    h = jnp.maximum(h, 0.0)
    out = layer(h, w5_ref, b5_ref)
    o_ref[...] = out.astype(o_ref.dtype)


def prepare_params(params, out_pad=LANE):
    """Cast weights to bf16 (once, outside the kernel) and zero-pad the final
    layer's W/b to `out_pad` columns for lane-dense output stores."""
    ws, bs = [], []
    n = len(params)
    for i, (w, b) in enumerate(params):
        if i == n - 1 and w.shape[1] < out_pad:
            w = jnp.pad(w, ((0, 0), (0, out_pad - w.shape[1])))
            b = jnp.pad(b, ((0, 0), (0, out_pad - b.shape[1])))
        ws.append(w.astype(jnp.bfloat16))
        bs.append(b.astype(jnp.float32))
    return ws, bs


def deepq_forward(state, params, *, tb=256):
    """state: [B, in_dim] f32; params: list of (W[in,out], b[1,out]) f32 tuples."""
    B, in_dim = state.shape
    num_actions = params[-1][0].shape[1]

    ws, bs = prepare_params(params, out_pad=LANE)

    # Pad batch up to a multiple of the batch tile.
    n_tiles = pl.cdiv(B, tb)
    Bp = n_tiles * tb
    if Bp != B:
        state = jnp.pad(state, ((0, Bp - B), (0, 0)))

    flat = []
    in_specs = [pl.BlockSpec((tb, in_dim), lambda i: (i, 0))]
    for w, b in zip(ws, bs):
        flat.extend([w, b])
        # Full-array blocks, constant index_map -> resident across batch loop.
        in_specs.append(pl.BlockSpec(w.shape, lambda i: (0, 0)))
        in_specs.append(pl.BlockSpec(b.shape, lambda i: (0, 0)))

    out = pl.pallas_call(
        deepq_kernel,
        out_shape=jax.ShapeDtypeStruct((Bp, LANE), jnp.float32),
        grid=(n_tiles,),
        in_specs=in_specs,
        out_specs=pl.BlockSpec((tb, LANE), lambda i: (i, 0)),
        compiler_params=pltpu.CompilerParams(
            dimension_semantics=("parallel",)),
    )(state, *flat)

    return out[:B, :num_actions]


def init_deepq_params(key, in_dim=8, hidden_neurons=128, num_actions=4):
    """Deterministic init mimicking nn.Linear's uniform(-1/sqrt(fan_in), ...).
    Weights returned as [in, out] (transposed vs PyTorch's [out, in])."""
    dims = [in_dim, hidden_neurons, hidden_neurons, hidden_neurons,
            hidden_neurons, num_actions]
    params = []
    keys = jax.random.split(key, len(dims) - 1)
    for i, k in enumerate(keys):
        fan_in, fan_out = dims[i], dims[i + 1]
        bound = 1.0 / jnp.sqrt(jnp.float32(fan_in))
        kw, kb = jax.random.split(k)
        w = jax.random.uniform(kw, (fan_in, fan_out), jnp.float32, -bound, bound)
        b = jax.random.uniform(kb, (1, fan_out), jnp.float32, -bound, bound)
        params.append((w, b))
    return params


def deepq_reference_f32(state, params):
    """Pure f32 reference matching the PyTorch forward."""
    h = state
    for i, (w, b) in enumerate(params):
        h = h @ w + b
        if i < len(params) - 1:
            h = jnp.maximum(h, 0.0)
    return h


def deepq_reference_matched(state, params, num_actions):
    """Matched-precision reference (bf16 operands, f32 accumulation), to check
    the kernel bit-for-bit-ish against the same numerics it uses."""
    ws, bs = prepare_params(params, out_pad=LANE)
    h = state
    for i, (w, b) in enumerate(zip(ws, bs)):
        h = jnp.dot(h.astype(jnp.bfloat16), w,
                    preferred_element_type=jnp.float32) + b
        if i < len(ws) - 1:
            h = jnp.maximum(h, 0.0)
    return h[:, :num_actions]


if __name__ == "__main__":
    key = jax.random.PRNGKey(0)
    k_params, k_state = jax.random.split(key)

    in_dim, hidden, num_actions = 8, 128, 4
    batch = 8

    params = init_deepq_params(k_params, in_dim, hidden, num_actions)
    state = jax.random.normal(k_state, (batch, in_dim), jnp.float32)

    out = deepq_forward(state, params)
    out = jax.block_until_ready(out)
    assert out.shape == (batch, num_actions)

    # Tight check vs the matched-precision (bf16-dot, f32-acc) reference.
    ref_matched = deepq_reference_matched(state, params, num_actions)
    assert jnp.allclose(out, ref_matched, atol=1e-3, rtol=1e-3), \
        "mismatch vs matched-precision reference"

    # Loose check vs the pure-f32 PyTorch-equivalent reference (bf16 MXU error).
    ref_f32 = deepq_reference_f32(state, params)
    assert jnp.allclose(out, ref_f32, atol=5e-2, rtol=5e-2), \
        "mismatch vs f32 reference"

    print("KERNEL_OK")
</pallas_src>

<mosaic_0001>
module attributes {stable_mosaic.version = 11 : i64} {
  func.func @deepq_kernel(%arg0: i32, %arg1: memref<256x8xf32, #tpu.memory_space<vmem>>, %arg2: memref<8x128xbf16, #tpu.memory_space<vmem>>, %arg3: memref<1x128xf32, #tpu.memory_space<vmem>>, %arg4: memref<128x128xbf16, #tpu.memory_space<vmem>>, %arg5: memref<1x128xf32, #tpu.memory_space<vmem>>, %arg6: memref<128x128xbf16, #tpu.memory_space<vmem>>, %arg7: memref<1x128xf32, #tpu.memory_space<vmem>>, %arg8: memref<128x128xbf16, #tpu.memory_space<vmem>>, %arg9: memref<1x128xf32, #tpu.memory_space<vmem>>, %arg10: memref<128x128xbf16, #tpu.memory_space<vmem>>, %arg11: memref<1x128xf32, #tpu.memory_space<vmem>>, %arg12: memref<256x128xf32, #tpu.memory_space<vmem>>) attributes {dimension_semantics = [#tpu.dimension_semantics<parallel>], iteration_bounds = array<i64: 1>, scalar_prefetch = 0 : i64, scratch_operands = 0 : i64, tpu.core_type = #tpu.core_type<tc>, window_params = [{transform_indices = @transform_0, window_bounds = array<i64: 256, 8>}, {pipeline_mode = #tpu.pipeline_mode<synchronous>, transform_indices = @transform_1, window_bounds = array<i64: 8, 128>}, {pipeline_mode = #tpu.pipeline_mode<synchronous>, transform_indices = @transform_2, window_bounds = array<i64: 1, 128>}, {pipeline_mode = #tpu.pipeline_mode<synchronous>, transform_indices = @transform_3, window_bounds = array<i64: 128, 128>}, {pipeline_mode = #tpu.pipeline_mode<synchronous>, transform_indices = @transform_4, window_bounds = array<i64: 1, 128>}, {pipeline_mode = #tpu.pipeline_mode<synchronous>, transform_indices = @transform_5, window_bounds = array<i64: 128, 128>}, {pipeline_mode = #tpu.pipeline_mode<synchronous>, transform_indices = @transform_6, window_bounds = array<i64: 1, 128>}, {pipeline_mode = #tpu.pipeline_mode<synchronous>, transform_indices = @transform_7, window_bounds = array<i64: 128, 128>}, {pipeline_mode = #tpu.pipeline_mode<synchronous>, transform_indices = @transform_8, window_bounds = array<i64: 1, 128>}, {pipeline_mode = #tpu.pipeline_mode<synchronous>, transform_indices = @transform_9, window_bounds = array<i64: 128, 128>}, {pipeline_mode = #tpu.pipeline_mode<synchronous>, transform_indices = @transform_10, window_bounds = array<i64: 1, 128>}, {transform_indices = @transform_11, window_bounds = array<i64: 256, 128>}]} {
    %c0 = arith.constant 0 : index
    %c0_0 = arith.constant 0 : index
    %0 = vector.load %arg1[%c0, %c0_0] : memref<256x8xf32, #tpu.memory_space<vmem>>, vector<256x8xf32>
    %1 = arith.truncf %0 : vector<256x8xf32> to vector<256x8xbf16>
    %c0_1 = arith.constant 0 : index
    %c0_2 = arith.constant 0 : index
    %2 = vector.load %arg2[%c0_1, %c0_2] : memref<8x128xbf16, #tpu.memory_space<vmem>>, vector<8x128xbf16>
    %cst = arith.constant dense<0.000000e+00> : vector<256x128xf32>
    %3 = tpu.matmul %1, %2, %cst {dimension_numbers = #tpu.dot_dimension_numbers<[1], [0], [0], [1], [0, 0, 1, 1], [], []>} : vector<256x8xbf16>, vector<8x128xbf16>, vector<256x128xf32> -> vector<256x128xf32>
    %c0_3 = arith.constant 0 : index
    %c0_4 = arith.constant 0 : index
    %4 = vector.load %arg3[%c0_3, %c0_4] : memref<1x128xf32, #tpu.memory_space<vmem>>, vector<1x128xf32>
    %5 = vector.broadcast %4 : vector<1x128xf32> to vector<256x128xf32>
    %6 = arith.addf %3, %5 : vector<256x128xf32>
    %cst_5 = arith.constant 0.000000e+00 : f32
    %7 = vector.broadcast %cst_5 : f32 to vector<256x128xf32>
    %8 = arith.maximumf %6, %7 : vector<256x128xf32>
    %9 = arith.truncf %8 : vector<256x128xf32> to vector<256x128xbf16>
    %c0_6 = arith.constant 0 : index
    %c0_7 = arith.constant 0 : index
    %10 = vector.load %arg4[%c0_6, %c0_7] : memref<128x128xbf16, #tpu.memory_space<vmem>>, vector<128x128xbf16>
    %cst_8 = arith.constant dense<0.000000e+00> : vector<256x128xf32>
    %11 = tpu.matmul %9, %10, %cst_8 {dimension_numbers = #tpu.dot_dimension_numbers<[1], [0], [0], [1], [0, 0, 1, 1], [], []>} : vector<256x128xbf16>, vector<128x128xbf16>, vector<256x128xf32> -> vector<256x128xf32>
    %c0_9 = arith.constant 0 : index
    %c0_10 = arith.constant 0 : index
    %12 = vector.load %arg5[%c0_9, %c0_10] : memref<1x128xf32, #tpu.memory_space<vmem>>, vector<1x128xf32>
    %13 = vector.broadcast %12 : vector<1x128xf32> to vector<256x128xf32>
    %14 = arith.addf %11, %13 : vector<256x128xf32>
    %cst_11 = arith.constant 0.000000e+00 : f32
    %15 = vector.broadcast %cst_11 : f32 to vector<256x128xf32>
    %16 = arith.maximumf %14, %15 : vector<256x128xf32>
    %17 = arith.truncf %16 : vector<256x128xf32> to vector<256x128xbf16>
    %c0_12 = arith.constant 0 : index
    %c0_13 = arith.constant 0 : index
    %18 = vector.load %arg6[%c0_12, %c0_13] : memref<128x128xbf16, #tpu.memory_space<vmem>>, vector<128x128xbf16>
    %cst_14 = arith.constant dense<0.000000e+00> : vector<256x128xf32>
    %19 = tpu.matmul %17, %18, %cst_14 {dimension_numbers = #tpu.dot_dimension_numbers<[1], [0], [0], [1], [0, 0, 1, 1], [], []>} : vector<256x128xbf16>, vector<128x128xbf16>, vector<256x128xf32> -> vector<256x128xf32>
    %c0_15 = arith.constant 0 : index
    %c0_16 = arith.constant 0 : index
    %20 = vector.load %arg7[%c0_15, %c0_16] : memref<1x128xf32, #tpu.memory_space<vmem>>, vector<1x128xf32>
    %21 = vector.broadcast %20 : vector<1x128xf32> to vector<256x128xf32>
    %22 = arith.addf %19, %21 : vector<256x128xf32>
    %cst_17 = arith.constant 0.000000e+00 : f32
    %23 = vector.broadcast %cst_17 : f32 to vector<256x128xf32>
    %24 = arith.maximumf %22, %23 : vector<256x128xf32>
    %25 = arith.truncf %24 : vector<256x128xf32> to vector<256x128xbf16>
    %c0_18 = arith.constant 0 : index
    %c0_19 = arith.constant 0 : index
    %26 = vector.load %arg8[%c0_18, %c0_19] : memref<128x128xbf16, #tpu.memory_space<vmem>>, vector<128x128xbf16>
    %cst_20 = arith.constant dense<0.000000e+00> : vector<256x128xf32>
    %27 = tpu.matmul %25, %26, %cst_20 {dimension_numbers = #tpu.dot_dimension_numbers<[1], [0], [0], [1], [0, 0, 1, 1], [], []>} : vector<256x128xbf16>, vector<128x128xbf16>, vector<256x128xf32> -> vector<256x128xf32>
    %c0_21 = arith.constant 0 : index
    %c0_22 = arith.constant 0 : index
    %28 = vector.load %arg9[%c0_21, %c0_22] : memref<1x128xf32, #tpu.memory_space<vmem>>, vector<1x128xf32>
    %29 = vector.broadcast %28 : vector<1x128xf32> to vector<256x128xf32>
    %30 = arith.addf %27, %29 : vector<256x128xf32>
    %cst_23 = arith.constant 0.000000e+00 : f32
    %31 = vector.broadcast %cst_23 : f32 to vector<256x128xf32>
    %32 = arith.maximumf %30, %31 : vector<256x128xf32>
    %33 = arith.truncf %32 : vector<256x128xf32> to vector<256x128xbf16>
    %c0_24 = arith.constant 0 : index
    %c0_25 = arith.constant 0 : index
    %34 = vector.load %arg10[%c0_24, %c0_25] : memref<128x128xbf16, #tpu.memory_space<vmem>>, vector<128x128xbf16>
    %cst_26 = arith.constant dense<0.000000e+00> : vector<256x128xf32>
    %35 = tpu.matmul %33, %34, %cst_26 {dimension_numbers = #tpu.dot_dimension_numbers<[1], [0], [0], [1], [0, 0, 1, 1], [], []>} : vector<256x128xbf16>, vector<128x128xbf16>, vector<256x128xf32> -> vector<256x128xf32>
    %c0_27 = arith.constant 0 : index
    %c0_28 = arith.constant 0 : index
    %36 = vector.load %arg11[%c0_27, %c0_28] : memref<1x128xf32, #tpu.memory_space<vmem>>, vector<1x128xf32>
    %37 = vector.broadcast %36 : vector<1x128xf32> to vector<256x128xf32>
    %38 = arith.addf %35, %37 : vector<256x128xf32>
    %c0_29 = arith.constant 0 : index
    %c0_30 = arith.constant 0 : index
    %39 = vector.load %arg12[%c0_29, %c0_30] : memref<256x128xf32, #tpu.memory_space<vmem>>, vector<256x128xf32>
    tpu.vector_store %arg12[%c0_29, %c0_30], %38 {strides = array<i32>} : memref<256x128xf32, #tpu.memory_space<vmem>>, vector<256x128xf32>,
    return
  }
  func.func @transform_0(%arg0: i32) -> (i32, i32) {
    %c0_i32 = arith.constant 0 : i32
    %c0_i32_0 = arith.constant 0 : i32
    return %arg0, %c0_i32 : i32, i32
  }
  func.func @transform_1(%arg0: i32) -> (i32, i32) {
    %c0_i32 = arith.constant 0 : i32
    %c0_i32_0 = arith.constant 0 : i32
    %c0_i32_1 = arith.constant 0 : i32
    return %c0_i32, %c0_i32_0 : i32, i32
  }
  func.func @transform_2(%arg0: i32) -> (i32, i32) {
    %c0_i32 = arith.constant 0 : i32
    %c0_i32_0 = arith.constant 0 : i32
    %c0_i32_1 = arith.constant 0 : i32
    return %c0_i32, %c0_i32_0 : i32, i32
  }
  func.func @transform_3(%arg0: i32) -> (i32, i32) {
    %c0_i32 = arith.constant 0 : i32
    %c0_i32_0 = arith.constant 0 : i32
    %c0_i32_1 = arith.constant 0 : i32
    return %c0_i32, %c0_i32_0 : i32, i32
  }
  func.func @transform_4(%arg0: i32) -> (i32, i32) {
    %c0_i32 = arith.constant 0 : i32
    %c0_i32_0 = arith.constant 0 : i32
    %c0_i32_1 = arith.constant 0 : i32
    return %c0_i32, %c0_i32_0 : i32, i32
  }
  func.func @transform_5(%arg0: i32) -> (i32, i32) {
    %c0_i32 = arith.constant 0 : i32
    %c0_i32_0 = arith.constant 0 : i32
    %c0_i32_1 = arith.constant 0 : i32
    return %c0_i32, %c0_i32_0 : i32, i32
  }
  func.func @transform_6(%arg0: i32) -> (i32, i32) {
    %c0_i32 = arith.constant 0 : i32
    %c0_i32_0 = arith.constant 0 : i32
    %c0_i32_1 = arith.constant 0 : i32
    return %c0_i32, %c0_i32_0 : i32, i32
  }
  func.func @transform_7(%arg0: i32) -> (i32, i32) {
    %c0_i32 = arith.constant 0 : i32
    %c0_i32_0 = arith.constant 0 : i32
    %c0_i32_1 = arith.constant 0 : i32
    return %c0_i32, %c0_i32_0 : i32, i32
  }
  func.func @transform_8(%arg0: i32) -> (i32, i32) {
    %c0_i32 = arith.constant 0 : i32
    %c0_i32_0 = arith.constant 0 : i32
    %c0_i32_1 = arith.constant 0 : i32
    return %c0_i32, %c0_i32_0 : i32, i32
  }
  func.func @transform_9(%arg0: i32) -> (i32, i32) {
    %c0_i32 = arith.constant 0 : i32
    %c0_i32_0 = arith.constant 0 : i32
    %c0_i32_1 = arith.constant 0 : i32
    return %c0_i32, %c0_i32_0 : i32, i32
  }
  func.func @transform_10(%arg0: i32) -> (i32, i32) {
    %c0_i32 = arith.constant 0 : i32
    %c0_i32_0 = arith.constant 0 : i32
    %c0_i32_1 = arith.constant 0 : i32
    return %c0_i32, %c0_i32_0 : i32, i32
  }
  func.func @transform_11(%arg0: i32) -> (i32, i32) {
    %c0_i32 = arith.constant 0 : i32
    %c0_i32_0 = arith.constant 0 : i32
    return %arg0, %c0_i32 : i32, i32
  }
}

</mosaic_0001>

<bundles_post_ra>
// kernel: tpu_custom_call.1
= control target key start
LH: loop header
LB: loop body
LE: loop exit
PB: predicated region body
PF: predicated region fallthrough
CT: control target
= control target key end

     0   :  { %vm145_vm0 = vcmask 1043456   ;;  %vm96_vm1 = vcmask 64512   ;;  %s2408_s0 = inlined_call_operand.vmem [shape: f32[256,8], index: 0, kind: input, shape index: {}]   ;;  %s2409_s1 = inlined_call_operand.vmem [shape: bf16[8,128], index: 1, kind: input, shape index: {}]   ;;  %s2410_s2 = inlined_call_operand.vmem [shape: f32[1,128], index: 2, kind: input, shape index: {}]   ;;  %s2411_s3 = inlined_call_operand.vmem [shape: bf16[128,128], index: 3, kind: input, shape index: {}]   ;;  %s2412_s4 = inlined_call_operand.vmem [shape: f32[1,128], index: 4, kind: input, shape index: {}]   ;;  %s2413_s5 = inlined_call_operand.vmem [shape: bf16[128,128], index: 5, kind: input, shape index: {}]   ;;  %s2414_s6 = inlined_call_operand.vmem [shape: f32[1,128], index: 6, kind: input, shape index: {}]   ;;  %s2415_s7 = inlined_call_operand.vmem [shape: bf16[128,128], index: 7, kind: input, shape index: {}]   ;;  %s2416_s8 = inlined_call_operand.vmem [shape: f32[1,128], index: 8, kind: input, shape index: {}]   ;;  %s2417_s9 = inlined_call_operand.vmem [shape: bf16[128,128], index: 9, kind: input, shape index: {}]   ;;  %s2418_s10 = inlined_call_operand.vmem [shape: f32[1,128], index: 10, kind: input, shape index: {}]   ;;  %s2419_s11 = inlined_call_operand.hbm [shape: f32[256,128], index: 11, kind: output, shape index: {}]  }
   0x1   :  { %v88_v0 = vld [vmem:[%s2409_s1] sm:$0xf]  ;;  %v41_v2 = vld [vmem:[%s2408_s0 + $0x8] sm:$0xff]  ;;  %v42_v5 = vld [vmem:[%s2408_s0 + $0x10] sm:$0xff] }
   0x2   :  { %v40_v1 = vld [vmem:[%s2408_s0] sm:$0xff]  ;;  %1872 = vmatprep.subr.msk.bf16.mxu0 %vm145_vm0, %v88_v0  ;;  %v147_v3 = vsel %vm145_vm0, %v88_v0, 0  ;;  %v43_v6 = vld [vmem:[%s2408_s0 + $0x18] sm:$0xff]  ;;  %1873 = vmatprep.subr.msk.bf16.mxu1 %vm145_vm0, %v88_v0  ;;  %v45_v9 = vld [vmem:[%s2408_s0 + $0x28] sm:$0xff] }
   0x3   :  { %v72_v4 = vpack.c.bf16 %v41_v2, %v40_v1  ;;  %v44_v7 = vld [vmem:[%s2408_s0 + $0x20] sm:$0xff]  ;;  %1645 = vmatpush3.bf16.msra.mxu0 %v147_v3  ;;  %v73_v8 = vpack.c.bf16 %v43_v6, %v42_v5  ;;  %1871 = vmatpush3.bf16.msra.mxu1 %v147_v3  ;;  %v46_v11 = vld [vmem:[%s2408_s0 + $0x30] sm:$0xff]  ;;  %v47_v12 = vld [vmem:[%s2408_s0 + $0x38] sm:$0xff] }
   0x4   :  { %v74_v10 = vpack.c.bf16 %v45_v9, %v44_v7  ;;  %v48_v13 = vld [vmem:[%s2408_s0 + $0x40] sm:$0xff]  ;;  %v57_v15 = vld [vmem:[%s2408_s0 + $0x88] sm:$0xff]  ;;  %v58_v16 = vld [vmem:[%s2408_s0 + $0x90] sm:$0xff]  ;;  %v75_v24 = vpack.c.bf16 %v47_v12, %v46_v11 }
   0x5   :  { %1646 = vmatprep.mubr.msk.bf16.mxu0 %vm96_vm1, %v72_v4  ;;  %v56_v14 = vld [vmem:[%s2408_s0 + $0x80] sm:$0xff]  ;;  %v59_v17 = vld [vmem:[%s2408_s0 + $0x98] sm:$0xff]  ;;  %v49_v18 = vld [vmem:[%s2408_s0 + $0x48] sm:$0xff] }
   0x6   :  { %1647 = vmatmul.mubr.msk.bf16.vlgmr.msra.gmra.mxu0 %vm96_vm1, %v73_v8  ;;  %v80_v19 = vpack.c.bf16 %v57_v15, %v56_v14  ;;  %v81_v20 = vpack.c.bf16 %v59_v17, %v58_v16  ;;  %v60_v21 = vld [vmem:[%s2408_s0 + $0xa0] sm:$0xff]  ;;  %v61_v22 = vld [vmem:[%s2408_s0 + $0xa8] sm:$0xff]  ;;  %v62_v25 = vld [vmem:[%s2408_s0 + $0xb0] sm:$0xff]  ;;  %v76_v26 = vpack.c.bf16 %v49_v18, %v48_v13 }
   0x7   :  { %1650 = vmatprep.mubr.msk.bf16.mxu0 %vm96_vm1, %v74_v10  ;;  %v82_v23 = vpack.c.bf16 %v61_v22, %v60_v21  ;;  %v63_v27 = vld [vmem:[%s2408_s0 + $0xb8] sm:$0xff]  ;;  %v64_v28 = vld [vmem:[%s2408_s0 + $0xc0] sm:$0xff]  ;;  %v65_v29 = vld [vmem:[%s2408_s0 + $0xc8] sm:$0xff] }
   0x8   :  { %1662 = vmatprep.mubr.msk.bf16.mxu1 %vm96_vm1, %v80_v19  ;;  %v1877_v30 = vld [vmem:[%s2411_s3 + $0x38] sm:$0xff]   ;;  %v50_v31 = vld [vmem:[%s2408_s0 + $0x50] sm:$0xff]  ;;  %v52_v34 = vld [vmem:[%s2408_s0 + $0x60] sm:$0xff]  ;;  %v83_v36 = vpack.c.bf16 %v63_v27, %v62_v25  ;;  %v84_v37 = vpack.c.bf16 %v65_v29, %v64_v28 }
   0x9   :  { %1663 = vmatmul.mubr.msk.bf16.vlgmr.msra.gmra.mxu1 %vm96_vm1, %v81_v20  ;;  %v51_v32 = vld [vmem:[%s2408_s0 + $0x58] sm:$0xff]  ;;  %v1878_v33 = vld [vmem:[%s2411_s3 + $0x30] sm:$0xff]   ;;  %1678 = vmatprep.subr.bf16.mxu1 %v1877_v30  ;;  %v53_v35 = vld [vmem:[%s2408_s0 + $0x68] sm:$0xff] }
   0xa   :  { %1666 = vmatprep.mubr.msk.bf16.mxu1 %vm96_vm1, %v82_v23  ;;  %1679 = vmatpush3.bf16.msra.mxu1 %v1877_v30  ;;  %v1879_v38 = vld [vmem:[%s2411_s3 + $0x28] sm:$0xff]   ;;  %v77_v39 = vpack.c.bf16 %v51_v32, %v50_v31  ;;  %v66_v40 = vld [vmem:[%s2408_s0 + $0xd0] sm:$0xff]  ;;  %v67_v41 = vld [vmem:[%s2408_s0 + $0xd8] sm:$0xff]  ;;  %v78_v42 = vpack.c.bf16 %v53_v35, %v52_v34 }
   0xb   :  { %1680 = vmatprep.subr.bf16.mxu1 %v1878_v33  ;;  %v68_v43 = vld [vmem:[%s2408_s0 + $0xe0] sm:$0xff]  ;;  %v69_v44 = vld [vmem:[%s2408_s0 + $0xe8] sm:$0xff]  ;;  %v54_v46 = vld [vmem:[%s2408_s0 + $0x70] sm:$0xff]  ;;  %v85_v48 = vpack.c.bf16 %v67_v41, %v66_v40 }
   0xc   :  { %v1880_v45 = vld [vmem:[%s2411_s3 + $0x20] sm:$0xff]   ;;  %v55_v47 = vld [vmem:[%s2408_s0 + $0x78] sm:$0xff]  ;;  %v86_v50 = vpack.c.bf16 %v69_v44, %v68_v43  ;;  %v70_v52 = vld [vmem:[%s2408_s0 + $0xf0] sm:$0xff] }
   0xd   :  { %v1881_v49 = vld [vmem:[%s2411_s3 + $0x18] sm:$0xff]   ;;  %v79_v51 = vpack.c.bf16 %v55_v47, %v54_v46 }
   0xe   :  { %1651 = vmatmul.mubr.msk.bf16.gmra.mxu0 %vm96_vm1, %v75_v24  ;;  %1681 = vmatpush3.bf16.msra.mxu1 %v1878_v33  ;;  %v71_v53 = vld [vmem:[%s2408_s0 + $0xf8] sm:$0xff] }
   0xf   :  { %1654 = vmatprep.mubr.msk.bf16.mxu0 %vm96_vm1, %v76_v26  ;;  %1682 = vmatprep.subr.bf16.mxu1 %v1879_v38  ;;  %v87_v54 = vpack.c.bf16 %v71_v53, %v70_v52 }
  0x11   :  { %1667 = vmatmul.mubr.msk.bf16.gmra.mxu1 %vm96_vm1, %v83_v36 }
  0x12   :  { %1670 = vmatprep.mubr.msk.bf16.mxu1 %vm96_vm1, %v84_v37  ;;  %1683 = vmatpush3.bf16.msra.mxu1 %v1879_v38 }
  0x13   :  { %1684 = vmatprep.subr.bf16.mxu1 %v1880_v45 }
  0x16   :  { %1655 = vmatmul.mubr.msk.bf16.gmra.mxu0 %vm96_vm1, %v77_v39  ;;  %1685 = vmatpush3.bf16.msra.mxu1 %v1880_v45 }
  0x17   :  { %1658 = vmatprep.mubr.msk.bf16.mxu0 %vm96_vm1, %v78_v42  ;;  %1686 = vmatprep.subr.bf16.mxu1 %v1881_v49 }
  0x19   :  { %1671 = vmatmul.mubr.msk.bf16.gmra.mxu1 %vm96_vm1, %v85_v48 }
  0x1a   :  { %1674 = vmatprep.mubr.msk.bf16.mxu1 %vm96_vm1, %v86_v50  ;;  %1687 = vmatpush3.bf16.msra.mxu1 %v1881_v49 }
  0x1e   :  { %1659 = vmatmul.mubr.msk.bf16.gmra.mxu0 %vm96_vm1, %v79_v51 }
  0x21   :  { %1675 = vmatmul.mubr.msk.bf16.gmra.mxu1 %vm96_vm1, %v87_v54 }
  0x22   :  { %16 = vsyncpa [#allocation3], 0  ;;  %v1882_v55 = vld [vmem:[%s2411_s3 + $0x10] sm:$0xff]   ;;  %v1883_v56 = vld [vmem:[%s2411_s3 + $0x8] sm:$0xff]  }
  0x23   :  { %1688 = vmatprep.subr.bf16.mxu1 %v1882_v55  ;;  %v1884_v57 = vld [vmem:[%s2411_s3] sm:$0xff]   ;;  %v1885_v58 = vld [vmem:[%s2413_s5 + $0x38] sm:$0xff]   ;;  %v1886_v59 = vld [vmem:[%s2413_s5 + $0x30] sm:$0xff]  }
  0x24   :  { %1689 = vmatpush3.bf16.msra.mxu1 %v1882_v55  ;;  %1726 = vmatprep.subr.bf16.mxu0 %v1885_v58  ;;  %v1887_v60 = vld [vmem:[%s2413_s5 + $0x28] sm:$0xff]   ;;  %v1888_v61 = vld [vmem:[%s2413_s5 + $0x20] sm:$0xff]   ;;  %v1889_v62 = vld [vmem:[%s2413_s5 + $0x18] sm:$0xff]  }
  0x25   :  { %1690 = vmatprep.subr.bf16.mxu1 %v1883_v56  ;;  %1727 = vmatpush3.bf16.msra.mxu0 %v1885_v58  ;;  %v2151_v1 = vld [vmem:[%s2410_s2] ss:$0 sm:$0xff] }
  0x26   :  { %1728 = vmatprep.subr.bf16.mxu0 %v1886_v59 }
  0x28   :  { %1691 = vmatpush3.bf16.msra.mxu1 %v1883_v56 }
  0x29   :  { %1692 = vmatprep.subr.bf16.mxu1 %v1884_v57  ;;  %1729 = vmatpush3.bf16.msra.mxu0 %v1886_v59 }
  0x2a   :  { %1730 = vmatprep.subr.bf16.mxu0 %v1887_v60 }
  0x2c   :  { %1693 = vmatpush3.bf16.msra.mxu1 %v1884_v57 }
  0x2d   :  { %1731 = vmatpush3.bf16.msra.mxu0 %v1887_v60 }
  0x2e   :  { %1732 = vmatprep.subr.bf16.mxu0 %v1888_v61 }
  0x31   :  { %1733 = vmatpush3.bf16.msra.mxu0 %v1888_v61 }
  0x32   :  { %1734 = vmatprep.subr.bf16.mxu0 %v1889_v62 }
  0x35   :  { %1735 = vmatpush3.bf16.msra.mxu0 %v1889_v62 }
  0xc6   :  { %v1648_v63 = vpop.f32.mrf.mxu0 }
  0xc7   :  { %v192_v6 = vadd.f32 %v1648_v63, %v2151_v1 }
  0xc8   :  { %v183_v0 = vpop.f32.mrf.mxu0 }
  0xc9   :  { %v184_v3 = vadd.f32 %v2151_v1, %v183_v0  ;;  %v2155_v5 = vpop.f32.mrf.mxu1  ;;  %v312_v15 = vmax.f32 %v192_v6, 0.0 }
  0xca   :  { %v1649_v2 = vpop.f32.mrf.mxu0 }
  0xcb   :  { %v195_v4 = vadd.f32 %v1649_v2, %v2151_v1  ;;  %v247_v9 = vpop.f32.mrf.mxu1  ;;  %v310_v12 = vmax.f32 %v184_v3, 0.0 }
  0xcc   :  { %v186_v7 = vpop.f32.mrf.mxu0  ;;  %v248_v53 = vadd.f32 %v2151_v1, %v247_v9 }
  0xcd   :  { %v187_v8 = vadd.f32 %v2151_v1, %v186_v7  ;;  %v313_v10 = vmax.f32 %v195_v4, 0.0  ;;  %v2159_v14 = vpop.f32.mrf.mxu1 }
  0xce   :  { %v1652_v11 = vpop.f32.mrf.mxu0  ;;  %v326_v62 = vmax.f32 %v248_v53, 0.0  ;;  %v1895_v53 = vld [vmem:[%s2415_s7 + $0x28] sm:$0xff]  }
  0xcf   :  { %v311_v13 = vmax.f32 %v187_v8, 0.0  ;;  %v250_v18 = vpop.f32.mrf.mxu1  ;;  %v343_v19 = vpack.c.bf16 %v313_v10, %v312_v15  ;;  %v208_v24 = vadd.f32 %v1652_v11, %v2151_v1  ;;  %v259_v15 = vadd.f32 %v2159_v14, %v2151_v1 }
  0xd0   :  { %v199_v16 = vpop.f32.mrf.mxu0  ;;  %v251_v54 = vadd.f32 %v2151_v1, %v250_v18 }
  0xd1   :  { %v342_v17 = vpack.c.bf16 %v311_v13, %v310_v12  ;;  %v200_v21 = vadd.f32 %v2151_v1, %v199_v16  ;;  %v2163_v23 = vpop.f32.mrf.mxu1  ;;  %v316_v33 = vmax.f32 %v208_v24, 0.0  ;;  %v256_v12 = vadd.f32 %v2155_v5, %v2151_v1 }
  0xd2   :  { %v1653_v20 = vpop.f32.mrf.mxu0  ;;  %v327_v0 = vmax.f32 %v251_v54, 0.0  ;;  %v272_v5 = vadd.f32 %v2163_v23, %v2151_v1  ;;  %v1896_v54 = vld [vmem:[%s2415_s7 + $0x20] sm:$0xff]  }
  0xd3   :  { %v211_v22 = vadd.f32 %v1653_v20, %v2151_v1  ;;  %1694 = vmatprep.mubr.bf16.mxu1 %v342_v17  ;;  %v263_v27 = vpop.f32.mrf.mxu1  ;;  %v314_v30 = vmax.f32 %v200_v21, 0.0  ;;  %v329_v20 = vmax.f32 %v259_v15, 0.0 }
  0xd4   :  { %v202_v25 = vpop.f32.mrf.mxu0  ;;  %1695 = vmatmul.mubr.bf16.vlgmr.msra.gmra.mxu1 %v343_v19  ;;  %v350_v9 = vpack.c.bf16 %v327_v0, %v326_v62  ;;  %v264_v10 = vadd.f32 %v2151_v1, %v263_v27  ;;  %v328_v19 = vmax.f32 %v256_v12, 0.0 }
  0xd5   :  { %v203_v26 = vadd.f32 %v2151_v1, %v202_v25  ;;  %v317_v28 = vmax.f32 %v211_v22, 0.0  ;;  %v2167_v32 = vpop.f32.mrf.mxu1 }
  0xd6   :  { %v1656_v29 = vpop.f32.mrf.mxu0  ;;  %v330_v17 = vmax.f32 %v264_v10, 0.0  ;;  %v275_v14 = vadd.f32 %v2167_v32, %v2151_v1 }
  0xd7   :  { %v315_v31 = vmax.f32 %v203_v26, 0.0  ;;  %v266_v36 = vpop.f32.mrf.mxu1  ;;  %v345_v37 = vpack.c.bf16 %v317_v28, %v316_v33  ;;  %v224_v42 = vadd.f32 %v1656_v29, %v2151_v1  ;;  %v351_v26 = vpack.c.bf16 %v329_v20, %v328_v19 }
  0xd8   :  { %v215_v34 = vpop.f32.mrf.mxu0  ;;  %v267_v11 = vadd.f32 %v2151_v1, %v266_v36 }
  0xd9   :  { %v344_v35 = vpack.c.bf16 %v315_v31, %v314_v30  ;;  %v216_v39 = vadd.f32 %v2151_v1, %v215_v34  ;;  %v2171_v41 = vpop.f32.mrf.mxu1  ;;  %v320_v50 = vmax.f32 %v224_v42, 0.0  ;;  %v332_v30 = vmax.f32 %v272_v5, 0.0 }
  0xda   :  { %v1657_v38 = vpop.f32.mrf.mxu0  ;;  %v331_v18 = vmax.f32 %v267_v11, 0.0  ;;  %v333_v31 = vmax.f32 %v275_v14, 0.0  ;;  %v288_v23 = vadd.f32 %v2171_v41, %v2151_v1  ;;  %v1890_v41 = vld [vmem:[%s2413_s5 + $0x10] sm:$0xff]  }
  0xdb   :  { %v227_v40 = vadd.f32 %v1657_v38, %v2151_v1  ;;  %1698 = vmatprep.mubr.bf16.mxu1 %v344_v35  ;;  %v279_v47 = vpop.f32.mrf.mxu1  ;;  %v318_v48 = vmax.f32 %v216_v39, 0.0  ;;  %1736 = vmatprep.subr.bf16.mxu0 %v1890_v41 }
  0xdc   :  { %v218_v43 = vpop.f32.mrf.mxu0  ;;  %1699 = vmatmul.mubr.bf16.gmra.mxu1 %v345_v37  ;;  %v352_v22 = vpack.c.bf16 %v331_v18, %v330_v17  ;;  %v280_v24 = vadd.f32 %v2151_v1, %v279_v47  ;;  %v353_v37 = vpack.c.bf16 %v333_v31, %v332_v30  ;;  %1737 = vmatpush3.bf16.msra.mxu0 %v1890_v41 }
  0xdd   :  { %v219_v44 = vadd.f32 %v2151_v1, %v218_v43  ;;  %v321_v45 = vmax.f32 %v227_v40, 0.0  ;;  %v1673_v57 = vpop.f32.mrf.mxu1  ;;  %v336_v40 = vmax.f32 %v288_v23, 0.0 }
  0xde   :  { %v1660_v46 = vpop.f32.mrf.mxu0  ;;  %v334_v28 = vmax.f32 %v280_v24, 0.0  ;;  %v291_v38 = vadd.f32 %v1673_v57, %v2151_v1  ;;  %v1899_v57 = vld [vmem:[%s2415_s7 + $0x8] sm:$0xff]  }
  0xdf   :  { %v319_v49 = vmax.f32 %v219_v44, 0.0  ;;  %v347_v55 = vpack.c.bf16 %v321_v45, %v320_v50  ;;  %v240_v60 = vadd.f32 %v1660_v46, %v2151_v1  ;;  %v282_v3 = vpop.f32.mrf.mxu1  ;;  %v1891_v50 = vld [vmem:[%s2413_s5 + $0x8] sm:$0xff]  }
  0xe0   :  { %v231_v51 = vpop.f32.mrf.mxu0  ;;  %v283_v25 = vadd.f32 %v2151_v1, %v282_v3  ;;  %v337_v42 = vmax.f32 %v291_v38, 0.0  ;;  %1738 = vmatprep.subr.bf16.mxu0 %v1891_v50 }
  0xe1   :  { %v346_v52 = vpack.c.bf16 %v319_v49, %v318_v48  ;;  %v232_v58 = vadd.f32 %v2151_v1, %v231_v51  ;;  %v324_v7 = vmax.f32 %v240_v60, 0.0  ;;  %v1676_v16 = vpop.f32.mrf.mxu1  ;;  %1739 = vmatpush3.bf16.msra.mxu0 %v1891_v50  ;;  %v1893_v51 = vld [vmem:[%s2415_s7 + $0x38] sm:$0xff]   ;;  %v2233_v60 = vld [vmem:[%s2412_s4] ss:$0 sm:$0xff] }
  0xe2   :  { %v1661_v56 = vpop.f32.mrf.mxu0  ;;  %v335_v29 = vmax.f32 %v283_v25, 0.0  ;;  %v355_v44 = vpack.c.bf16 %v337_v42, %v336_v40  ;;  %v304_v45 = vadd.f32 %v1676_v16, %v2151_v1  ;;  %1774 = vmatprep.subr.bf16.mxu1 %v1893_v51 }
  0xe3   :  { %v243_v59 = vadd.f32 %v1661_v56, %v2151_v1  ;;  %1702 = vmatprep.mubr.bf16.mxu1 %v346_v52  ;;  %v322_v4 = vmax.f32 %v232_v58, 0.0  ;;  %v295_v21 = vpop.f32.mrf.mxu1  ;;  %v1894_v52 = vld [vmem:[%s2415_s7 + $0x30] sm:$0xff]   ;;  %1775 = vmatpush3.bf16.msra.mxu1 %v1893_v51 }
  0xe4   :  { %v234_v61 = vpop.f32.mrf.mxu0  ;;  %1703 = vmatmul.mubr.bf16.gmra.mxu1 %v347_v55  ;;  %v354_v34 = vpack.c.bf16 %v335_v29, %v334_v28  ;;  %v296_v35 = vadd.f32 %v2151_v1, %v295_v21  ;;  %v340_v47 = vmax.f32 %v304_v45, 0.0  ;;  %1776 = vmatprep.subr.bf16.mxu1 %v1894_v52  ;;  %v1897_v55 = vld [vmem:[%s2415_s7 + $0x18] sm:$0xff]   ;;  %v1898_v56 = vld [vmem:[%s2415_s7 + $0x10] sm:$0xff]  }
  0xe5   :  { %v235_v63 = vadd.f32 %v2151_v1, %v234_v61  ;;  %v325_v2 = vmax.f32 %v243_v59, 0.0  ;;  %v1677_v27 = vpop.f32.mrf.mxu1 }
  0xe6   :  { %v338_v32 = vmax.f32 %v296_v35, 0.0  ;;  %v307_v46 = vadd.f32 %v1677_v27, %v2151_v1 }
  0xe7   :  { %v323_v6 = vmax.f32 %v235_v63, 0.0  ;;  %v349_v13 = vpack.c.bf16 %v325_v2, %v324_v7  ;;  %v298_v33 = vpop.f32.mrf.mxu1  ;;  %1777 = vmatpush3.bf16.msra.mxu1 %v1894_v52 }
  0xe8   :  { %v299_v36 = vadd.f32 %v2151_v1, %v298_v33  ;;  %v341_v48 = vmax.f32 %v307_v46, 0.0  ;;  %v1892_v1 = vld [vmem:[%s2413_s5] sm:$0xff]   ;;  %1778 = vmatprep.subr.bf16.mxu1 %v1895_v53 }
  0xe9   :  { %v348_v8 = vpack.c.bf16 %v323_v6, %v322_v4  ;;  %1740 = vmatprep.subr.bf16.mxu0 %v1892_v1 }
  0xea   :  { %v339_v39 = vmax.f32 %v299_v36, 0.0  ;;  %v357_v49 = vpack.c.bf16 %v341_v48, %v340_v47  ;;  %1741 = vmatpush3.bf16.msra.mxu0 %v1892_v1 }
  0xeb   :  { %1706 = vmatprep.mubr.bf16.mxu1 %v348_v8  ;;  %1779 = vmatpush3.bf16.msra.mxu1 %v1895_v53 }
  0xec   :  { %1707 = vmatmul.mubr.bf16.gmra.mxu1 %v349_v13  ;;  %v356_v43 = vpack.c.bf16 %v339_v39, %v338_v32  ;;  %1780 = vmatprep.subr.bf16.mxu1 %v1896_v54 }
  0xed   :  { %1710 = vmatprep.mubr.bf16.mxu1 %v350_v9 }
  0xef   :  { %1781 = vmatpush3.bf16.msra.mxu1 %v1896_v54 }
  0xf0   :  { %1782 = vmatprep.subr.bf16.mxu1 %v1897_v55 }
  0xf3   :  { %1783 = vmatpush3.bf16.msra.mxu1 %v1897_v55 }
  0xf4   :  { %1711 = vmatmul.mubr.bf16.gmra.mxu1 %v351_v26  ;;  %1784 = vmatprep.subr.bf16.mxu1 %v1898_v56 }
  0xf5   :  { %1714 = vmatprep.mubr.bf16.mxu1 %v352_v22 }
  0xf7   :  { %1785 = vmatpush3.bf16.msra.mxu1 %v1898_v56 }
  0xf8   :  { %1786 = vmatprep.subr.bf16.mxu1 %v1899_v57 }
  0xfb   :  { %1787 = vmatpush3.bf16.msra.mxu1 %v1899_v57 }
  0xfc   :  { %1715 = vmatmul.mubr.bf16.gmra.mxu1 %v353_v37 }
  0xfd   :  { %1718 = vmatprep.mubr.bf16.mxu1 %v354_v34 }
 0x104   :  { %1719 = vmatmul.mubr.bf16.gmra.mxu1 %v355_v44 }
 0x105   :  { %1722 = vmatprep.mubr.bf16.mxu1 %v356_v43 }
 0x10c   :  { %1723 = vmatmul.mubr.bf16.gmra.mxu1 %v357_v49 }
 0x194   :  { %v1696_v58 = vpop.f32.mrf.mxu1 }
 0x195   :  { %v472_v0 = vadd.f32 %v1696_v58, %v2233_v60 }
 0x196   :  { %v463_v59 = vpop.f32.mrf.mxu1 }
 0x197   :  { %v464_v62 = vadd.f32 %v2233_v60, %v463_v59  ;;  %v592_v9 = vmax.f32 %v472_v0, 0.0 }
 0x198   :  { %v1697_v61 = vpop.f32.mrf.mxu1 }
 0x199   :  { %v475_v63 = vadd.f32 %v1697_v61, %v2233_v60  ;;  %v590_v7 = vmax.f32 %v464_v62, 0.0 }
 0x19a   :  { %v466_v2 = vpop.f32.mrf.mxu1 }
 0x19b   :  { %v467_v3 = vadd.f32 %v2233_v60, %v466_v2  ;;  %v593_v4 = vmax.f32 %v475_v63, 0.0 }
 0x19c   :  { %v1700_v6 = vpop.f32.mrf.mxu1 }
 0x19d   :  { %v591_v8 = vmax.f32 %v467_v3, 0.0  ;;  %v623_v12 = vpack.c.bf16 %v593_v4, %v592_v9  ;;  %v488_v17 = vadd.f32 %v1700_v6, %v2233_v60 }
 0x19e   :  { %v479_v10 = vpop.f32.mrf.mxu1 }
 0x19f   :  { %v622_v11 = vpack.c.bf16 %v591_v8, %v590_v7  ;;  %v480_v15 = vadd.f32 %v2233_v60, %v479_v10  ;;  %v596_v25 = vmax.f32 %v488_v17, 0.0 }
 0x1a0   :  { %v1701_v13 = vpop.f32.mrf.mxu1 }
 0x1a1   :  { %v491_v16 = vadd.f32 %v1701_v13, %v2233_v60  ;;  %1742 = vmatprep.mubr.bf16.mxu0 %v622_v11  ;;  %v594_v22 = vmax.f32 %v480_v15, 0.0 }
 0x1a2   :  { %v482_v18 = vpop.f32.mrf.mxu1  ;;  %1743 = vmatmul.mubr.bf16.vlgmr.msra.gmra.mxu0 %v623_v12 }
 0x1a3   :  { %v483_v19 = vadd.f32 %v2233_v60, %v482_v18  ;;  %v597_v20 = vmax.f32 %v491_v16, 0.0 }
 0x1a4   :  { %v1704_v21 = vpop.f32.mrf.mxu1 }
 0x1a5   :  { %v595_v24 = vmax.f32 %v483_v19, 0.0  ;;  %v625_v14 = vpack.c.bf16 %v597_v20, %v596_v25  ;;  %v504_v30 = vadd.f32 %v1704_v21, %v2233_v60 }
 0x1a6   :  { %v495_v26 = vpop.f32.mrf.mxu1 }
 0x1a7   :  { %v624_v5 = vpack.c.bf16 %v595_v24, %v594_v22  ;;  %v496_v28 = vadd.f32 %v2233_v60, %v495_v26  ;;  %v600_v23 = vmax.f32 %v504_v30, 0.0 }
 0x1a8   :  { %v1705_v27 = vpop.f32.mrf.mxu1 }
 0x1a9   :  { %v507_v29 = vadd.f32 %v1705_v27, %v2233_v60  ;;  %1746 = vmatprep.mubr.bf16.mxu0 %v624_v5  ;;  %v598_v36 = vmax.f32 %v496_v28, 0.0 }
 0x1aa   :  { %v498_v31 = vpop.f32.mrf.mxu1  ;;  %1747 = vmatmul.mubr.bf16.gmra.mxu0 %v625_v14 }
 0x1ab   :  { %v499_v33 = vadd.f32 %v2233_v60, %v498_v31  ;;  %v601_v34 = vmax.f32 %v507_v29, 0.0 }
 0x1ac   :  { %v1708_v35 = vpop.f32.mrf.mxu1 }
 0x1ad   :  { %v599_v37 = vmax.f32 %v499_v33, 0.0  ;;  %v627_v39 = vpack.c.bf16 %v601_v34, %v600_v23  ;;  %v520_v44 = vadd.f32 %v1708_v35, %v2233_v60 }
 0x1ae   :  { %v511_v38 = vpop.f32.mrf.mxu1 }
 0x1af   :  { %v626_v32 = vpack.c.bf16 %v599_v37, %v598_v36  ;;  %v512_v42 = vadd.f32 %v2233_v60, %v511_v38  ;;  %v604_v50 = vmax.f32 %v520_v44, 0.0 }
 0x1b0   :  { %v1709_v40 = vpop.f32.mrf.mxu1 }
 0x1b1   :  { %v523_v43 = vadd.f32 %v1709_v40, %v2233_v60  ;;  %1750 = vmatprep.mubr.bf16.mxu0 %v626_v32  ;;  %v602_v49 = vmax.f32 %v512_v42, 0.0 }
 0x1b2   :  { %v514_v45 = vpop.f32.mrf.mxu1  ;;  %1751 = vmatmul.mubr.bf16.gmra.mxu0 %v627_v39 }
 0x1b3   :  { %v515_v46 = vadd.f32 %v2233_v60, %v514_v45  ;;  %v605_v47 = vmax.f32 %v523_v43, 0.0 }
 0x1b4   :  { %v1712_v48 = vpop.f32.mrf.mxu1 }
 0x1b5   :  { %v603_v41 = vmax.f32 %v515_v46, 0.0  ;;  %v629_v52 = vpack.c.bf16 %v605_v47, %v604_v50  ;;  %v536_v56 = vadd.f32 %v1712_v48, %v2233_v60  ;;  %v1900_v46 = vld [vmem:[%s2415_s7] sm:$0xff]   ;;  %v1901_v47 = vld [vmem:[%s2417_s9 + $0x38] sm:$0xff]   ;;  %v1903_v48 = vld [vmem:[%s2417_s9 + $0x28] sm:$0xff]  }
 0x1b6   :  { %v527_v1 = vpop.f32.mrf.mxu1  ;;  %1788 = vmatprep.subr.bf16.mxu1 %v1900_v46  ;;  %1822 = vmatprep.subr.bf16.mxu0 %v1901_v47  ;;  %v1906_v50 = vld [vmem:[%s2417_s9 + $0x10] sm:$0xff]  }
 0x1b7   :  { %v628_v51 = vpack.c.bf16 %v603_v41, %v602_v49  ;;  %v528_v54 = vadd.f32 %v2233_v60, %v527_v1  ;;  %v608_v0 = vmax.f32 %v536_v56, 0.0  ;;  %1789 = vmatpush3.bf16.msra.mxu1 %v1900_v46  ;;  %1823 = vmatpush3.bf16.msra.mxu0 %v1901_v47  ;;  %v1904_v49 = vld [vmem:[%s2417_s9 + $0x20] sm:$0xff]   ;;  %v1905_v41 = vld [vmem:[%s2417_s9 + $0x18] sm:$0xff]   ;;  %v1907_v1 = vld [vmem:[%s2417_s9 + $0x8] sm:$0xff]  }
 0x1b8   :  { %v1713_v53 = vpop.f32.mrf.mxu1 }
 0x1b9   :  { %v539_v55 = vadd.f32 %v1713_v53, %v2233_v60  ;;  %1754 = vmatprep.mubr.bf16.mxu0 %v628_v51  ;;  %v606_v62 = vmax.f32 %v528_v54, 0.0  ;;  %v2294_v53 = vld [vmem:[%s2414_s6] ss:$0 sm:$0xff] }
 0x1ba   :  { %v530_v57 = vpop.f32.mrf.mxu1  ;;  %1755 = vmatmul.mubr.bf16.gmra.mxu0 %v629_v52 }
 0x1bb   :  { %v531_v58 = vadd.f32 %v2233_v60, %v530_v57  ;;  %v609_v59 = vmax.f32 %v539_v55, 0.0 }
 0x1bc   :  { %v1716_v61 = vpop.f32.mrf.mxu1 }
 0x1bd   :  { %v607_v63 = vmax.f32 %v531_v58, 0.0  ;;  %v631_v4 = vpack.c.bf16 %v609_v59, %v608_v0  ;;  %v552_v9 = vadd.f32 %v1716_v61, %v2233_v60 }
 0x1be   :  { %v543_v2 = vpop.f32.mrf.mxu1 }
 0x1bf   :  { %v630_v3 = vpack.c.bf16 %v607_v63, %v606_v62  ;;  %v544_v7 = vadd.f32 %v2233_v60, %v543_v2  ;;  %v612_v17 = vmax.f32 %v552_v9, 0.0 }
 0x1c0   :  { %v1717_v6 = vpop.f32.mrf.mxu1 }
 0x1c1   :  { %v555_v8 = vadd.f32 %v1717_v6, %v2233_v60  ;;  %1758 = vmatprep.mubr.bf16.mxu0 %v630_v3  ;;  %v610_v15 = vmax.f32 %v544_v7, 0.0 }
 0x1c2   :  { %v546_v10 = vpop.f32.mrf.mxu1  ;;  %1759 = vmatmul.mubr.bf16.gmra.mxu0 %v631_v4 }
 0x1c3   :  { %v547_v11 = vadd.f32 %v2233_v60, %v546_v10  ;;  %v613_v12 = vmax.f32 %v555_v8, 0.0 }
 0x1c4   :  { %v1720_v13 = vpop.f32.mrf.mxu1 }
 0x1c5   :  { %v611_v16 = vmax.f32 %v547_v11, 0.0  ;;  %v633_v20 = vpack.c.bf16 %v613_v12, %v612_v17  ;;  %v568_v25 = vadd.f32 %v1720_v13, %v2233_v60 }
 0x1c6   :  { %v559_v18 = vpop.f32.mrf.mxu1 }
 0x1c7   :  { %v632_v19 = vpack.c.bf16 %v611_v16, %v610_v15  ;;  %v560_v22 = vadd.f32 %v2233_v60, %v559_v18  ;;  %v616_v30 = vmax.f32 %v568_v25, 0.0 }
 0x1c8   :  { %v1721_v21 = vpop.f32.mrf.mxu1 }
 0x1c9   :  { %v571_v24 = vadd.f32 %v1721_v21, %v2233_v60  ;;  %1762 = vmatprep.mubr.bf16.mxu0 %v632_v19  ;;  %v614_v28 = vmax.f32 %v560_v22, 0.0 }
 0x1ca   :  { %v562_v26 = vpop.f32.mrf.mxu1  ;;  %1763 = vmatmul.mubr.bf16.gmra.mxu0 %v633_v20 }
 0x1cb   :  { %v563_v5 = vadd.f32 %v2233_v60, %v562_v26  ;;  %v617_v14 = vmax.f32 %v571_v24, 0.0 }
 0x1cc   :  { %v1724_v27 = vpop.f32.mrf.mxu1 }
 0x1cd   :  { %v615_v29 = vmax.f32 %v563_v5, 0.0  ;;  %v635_v34 = vpack.c.bf16 %v617_v14, %v616_v30  ;;  %v584_v23 = vadd.f32 %v1724_v27, %v2233_v60 }
 0x1ce   :  { %v575_v31 = vpop.f32.mrf.mxu1 }
 0x1cf   :  { %v634_v33 = vpack.c.bf16 %v615_v29, %v614_v28  ;;  %v576_v36 = vadd.f32 %v2233_v60, %v575_v31  ;;  %v620_v43 = vmax.f32 %v584_v23, 0.0 }
 0x1d0   :  { %v1725_v35 = vpop.f32.mrf.mxu1 }
 0x1d1   :  { %v587_v37 = vadd.f32 %v1725_v35, %v2233_v60  ;;  %1766 = vmatprep.mubr.bf16.mxu0 %v634_v33  ;;  %v618_v40 = vmax.f32 %v576_v36, 0.0 }
 0x1d2   :  { %v578_v38 = vpop.f32.mrf.mxu1  ;;  %1767 = vmatmul.mubr.bf16.gmra.mxu0 %v635_v34 }
 0x1d3   :  { %v579_v32 = vadd.f32 %v2233_v60, %v578_v38  ;;  %v621_v39 = vmax.f32 %v587_v37, 0.0  ;;  %v1902_v60 = vld [vmem:[%s2417_s9 + $0x30] sm:$0xff]  }
 0x1d4   :  { %1824 = vmatprep.subr.bf16.mxu0 %v1902_v60 }
 0x1d5   :  { %v619_v42 = vmax.f32 %v579_v32, 0.0  ;;  %v637_v45 = vpack.c.bf16 %v621_v39, %v620_v43  ;;  %1825 = vmatpush3.bf16.msra.mxu0 %v1902_v60 }
 0x1d6   :  { %1826 = vmatprep.subr.bf16.mxu0 %v1903_v48 }
 0x1d7   :  { %v636_v44 = vpack.c.bf16 %v619_v42, %v618_v40 }
 0x1d9   :  { %1770 = vmatprep.mubr.bf16.mxu0 %v636_v44  ;;  %1827 = vmatpush3.bf16.msra.mxu0 %v1903_v48 }
 0x1da   :  { %1771 = vmatmul.mubr.bf16.gmra.mxu0 %v637_v45  ;;  %1828 = vmatprep.subr.bf16.mxu0 %v1904_v49 }
 0x1dd   :  { %1829 = vmatpush3.bf16.msra.mxu0 %v1904_v49 }
 0x1de   :  { %1830 = vmatprep.subr.bf16.mxu0 %v1905_v41 }
 0x1e1   :  { %1831 = vmatpush3.bf16.msra.mxu0 %v1905_v41 }
 0x1e2   :  { %1832 = vmatprep.subr.bf16.mxu0 %v1906_v50 }
 0x1e5   :  { %1833 = vmatpush3.bf16.msra.mxu0 %v1906_v50 }
 0x1e6   :  { %1834 = vmatprep.subr.bf16.mxu0 %v1907_v1 }
 0x1e9   :  { %1835 = vmatpush3.bf16.msra.mxu0 %v1907_v1 }
 0x262   :  { %v1744_v51 = vpop.f32.mrf.mxu0 }
 0x263   :  { %v752_v57 = vadd.f32 %v1744_v51, %v2294_v53 }
 0x264   :  { %v743_v52 = vpop.f32.mrf.mxu0 }
 0x265   :  { %v744_v55 = vadd.f32 %v2294_v53, %v743_v52  ;;  %v872_v2 = vmax.f32 %v752_v57, 0.0 }
 0x266   :  { %v1745_v54 = vpop.f32.mrf.mxu0 }
 0x267   :  { %v755_v56 = vadd.f32 %v1745_v54, %v2294_v53  ;;  %v870_v63 = vmax.f32 %v744_v55, 0.0 }
 0x268   :  { %v746_v58 = vpop.f32.mrf.mxu0 }
 0x269   :  { %v747_v59 = vadd.f32 %v2294_v53, %v746_v58  ;;  %v873_v61 = vmax.f32 %v755_v56, 0.0 }
 0x26a   :  { %v1748_v62 = vpop.f32.mrf.mxu0 }
 0x26b   :  { %v871_v0 = vmax.f32 %v747_v59, 0.0  ;;  %v903_v6 = vpack.c.bf16 %v873_v61, %v872_v2  ;;  %v768_v10 = vadd.f32 %v1748_v62, %v2294_v53 }
 0x26c   :  { %v759_v3 = vpop.f32.mrf.mxu0 }
 0x26d   :  { %v902_v4 = vpack.c.bf16 %v871_v0, %v870_v63  ;;  %v760_v8 = vadd.f32 %v2294_v53, %v759_v3  ;;  %v876_v18 = vmax.f32 %v768_v10, 0.0 }
 0x26e   :  { %v1749_v7 = vpop.f32.mrf.mxu0 }
 0x26f   :  { %v771_v9 = vadd.f32 %v1749_v7, %v2294_v53  ;;  %1790 = vmatprep.mubr.bf16.mxu1 %v902_v4  ;;  %v874_v16 = vmax.f32 %v760_v8, 0.0 }
 0x270   :  { %v762_v11 = vpop.f32.mrf.mxu0  ;;  %1791 = vmatmul.mubr.bf16.vlgmr.msra.gmra.mxu1 %v903_v6 }
 0x271   :  { %v763_v12 = vadd.f32 %v2294_v53, %v762_v11  ;;  %v877_v13 = vmax.f32 %v771_v9, 0.0 }
 0x272   :  { %v1752_v15 = vpop.f32.mrf.mxu0 }
 0x273   :  { %v875_v17 = vmax.f32 %v763_v12, 0.0  ;;  %v905_v21 = vpack.c.bf16 %v877_v13, %v876_v18  ;;  %v784_v26 = vadd.f32 %v1752_v15, %v2294_v53 }
 0x274   :  { %v775_v19 = vpop.f32.mrf.mxu0 }
 0x275   :  { %v904_v20 = vpack.c.bf16 %v875_v17, %v874_v16  ;;  %v776_v24 = vadd.f32 %v2294_v53, %v775_v19  ;;  %v880_v31 = vmax.f32 %v784_v26, 0.0 }
 0x276   :  { %v1753_v22 = vpop.f32.mrf.mxu0 }
 0x277   :  { %v787_v25 = vadd.f32 %v1753_v22, %v2294_v53  ;;  %1794 = vmatprep.mubr.bf16.mxu1 %v904_v20  ;;  %v878_v29 = vmax.f32 %v776_v24, 0.0 }
 0x278   :  { %v778_v5 = vpop.f32.mrf.mxu0  ;;  %1795 = vmatmul.mubr.bf16.gmra.mxu1 %v905_v21 }
 0x279   :  { %v779_v14 = vadd.f32 %v2294_v53, %v778_v5  ;;  %v881_v27 = vmax.f32 %v787_v25, 0.0 }
 0x27a   :  { %v1756_v28 = vpop.f32.mrf.mxu0 }
 0x27b   :  { %v879_v30 = vmax.f32 %v779_v14, 0.0  ;;  %v907_v35 = vpack.c.bf16 %v881_v27, %v880_v31  ;;  %v800_v38 = vadd.f32 %v1756_v28, %v2294_v53 }
 0x27c   :  { %v791_v33 = vpop.f32.mrf.mxu0 }
 0x27d   :  { %v906_v34 = vpack.c.bf16 %v879_v30, %v878_v29  ;;  %v792_v37 = vadd.f32 %v2294_v53, %v791_v33  ;;  %v884_v45 = vmax.f32 %v800_v38, 0.0 }
 0x27e   :  { %v1757_v36 = vpop.f32.mrf.mxu0 }
 0x27f   :  { %v803_v23 = vadd.f32 %v1757_v36, %v2294_v53  ;;  %1798 = vmatprep.mubr.bf16.mxu1 %v906_v34  ;;  %v882_v43 = vmax.f32 %v792_v37, 0.0 }
 0x280   :  { %v794_v32 = vpop.f32.mrf.mxu0  ;;  %1799 = vmatmul.mubr.bf16.gmra.mxu1 %v907_v35 }
 0x281   :  { %v795_v39 = vadd.f32 %v2294_v53, %v794_v32  ;;  %v885_v40 = vmax.f32 %v803_v23, 0.0 }
 0x282   :  { %v1760_v42 = vpop.f32.mrf.mxu0 }
 0x283   :  { %v883_v44 = vmax.f32 %v795_v39, 0.0  ;;  %v909_v60 = vpack.c.bf16 %v885_v40, %v884_v45  ;;  %v816_v50 = vadd.f32 %v1760_v42, %v2294_v53  ;;  %v1908_v39 = vld [vmem:[%s2417_s9] sm:$0xff]  }
 0x284   :  { %v807_v46 = vpop.f32.mrf.mxu0  ;;  %1836 = vmatprep.subr.bf16.mxu0 %v1908_v39 }
 0x285   :  { %v908_v47 = vpack.c.bf16 %v883_v44, %v882_v43  ;;  %v808_v49 = vadd.f32 %v2294_v53, %v807_v46  ;;  %v888_v57 = vmax.f32 %v816_v50, 0.0  ;;  %1837 = vmatpush3.bf16.msra.mxu0 %v1908_v39 }
 0x286   :  { %v1761_v48 = vpop.f32.mrf.mxu0 }
 0x287   :  { %v819_v41 = vadd.f32 %v1761_v48, %v2294_v53  ;;  %1802 = vmatprep.mubr.bf16.mxu1 %v908_v47  ;;  %v886_v55 = vmax.f32 %v808_v49, 0.0 }
 0x288   :  { %v810_v1 = vpop.f32.mrf.mxu0  ;;  %1803 = vmatmul.mubr.bf16.gmra.mxu1 %v909_v60 }
 0x289   :  { %v811_v51 = vadd.f32 %v2294_v53, %v810_v1  ;;  %v889_v52 = vmax.f32 %v819_v41, 0.0 }
 0x28a   :  { %v1764_v54 = vpop.f32.mrf.mxu0 }
 0x28b   :  { %v887_v56 = vmax.f32 %v811_v51, 0.0  ;;  %v911_v61 = vpack.c.bf16 %v889_v52, %v888_v57  ;;  %v832_v2 = vadd.f32 %v1764_v54, %v2294_v53 }
 0x28c   :  { %v823_v58 = vpop.f32.mrf.mxu0 }
 0x28d   :  { %v910_v59 = vpack.c.bf16 %v887_v56, %v886_v55  ;;  %v824_v63 = vadd.f32 %v2294_v53, %v823_v58  ;;  %v892_v10 = vmax.f32 %v832_v2, 0.0 }
 0x28e   :  { %v1765_v62 = vpop.f32.mrf.mxu0 }
 0x28f   :  { %v835_v0 = vadd.f32 %v1765_v62, %v2294_v53  ;;  %1806 = vmatprep.mubr.bf16.mxu1 %v910_v59  ;;  %v890_v8 = vmax.f32 %v824_v63, 0.0 }
 0x290   :  { %v826_v3 = vpop.f32.mrf.mxu0  ;;  %1807 = vmatmul.mubr.bf16.gmra.mxu1 %v911_v61 }
 0x291   :  { %v827_v4 = vadd.f32 %v2294_v53, %v826_v3  ;;  %v893_v6 = vmax.f32 %v835_v0, 0.0 }
 0x292   :  { %v1768_v7 = vpop.f32.mrf.mxu0 }
 0x293   :  { %v891_v9 = vmax.f32 %v827_v4, 0.0  ;;  %v913_v13 = vpack.c.bf16 %v893_v6, %v892_v10  ;;  %v848_v18 = vadd.f32 %v1768_v7, %v2294_v53 }
 0x294   :  { %v839_v11 = vpop.f32.mrf.mxu0 }
 0x295   :  { %v912_v12 = vpack.c.bf16 %v891_v9, %v890_v8  ;;  %v840_v16 = vadd.f32 %v2294_v53, %v839_v11  ;;  %v896_v26 = vmax.f32 %v848_v18, 0.0 }
 0x296   :  { %v1769_v15 = vpop.f32.mrf.mxu0 }
 0x297   :  { %v851_v17 = vadd.f32 %v1769_v15, %v2294_v53  ;;  %1810 = vmatprep.mubr.bf16.mxu1 %v912_v12  ;;  %v894_v24 = vmax.f32 %v840_v16, 0.0 }
 0x298   :  { %v842_v19 = vpop.f32.mrf.mxu0  ;;  %1811 = vmatmul.mubr.bf16.gmra.mxu1 %v913_v13 }
 0x299   :  { %v843_v20 = vadd.f32 %v2294_v53, %v842_v19  ;;  %v897_v21 = vmax.f32 %v851_v17, 0.0 }
 0x29a   :  { %v1772_v22 = vpop.f32.mrf.mxu0 }
 0x29b   :  { %v895_v25 = vmax.f32 %v843_v20, 0.0  ;;  %v915_v27 = vpack.c.bf16 %v897_v21, %v896_v26  ;;  %v864_v31 = vadd.f32 %v1772_v22, %v2294_v53 }
 0x29c   :  { %v855_v5 = vpop.f32.mrf.mxu0 }
 0x29d   :  { %v914_v14 = vpack.c.bf16 %v895_v25, %v894_v24  ;;  %v856_v29 = vadd.f32 %v2294_v53, %v855_v5  ;;  %v900_v23 = vmax.f32 %v864_v31, 0.0 }
 0x29e   :  { %v1773_v28 = vpop.f32.mrf.mxu0 }
 0x29f   :  { %v867_v30 = vadd.f32 %v1773_v28, %v2294_v53  ;;  %1814 = vmatprep.mubr.bf16.mxu1 %v914_v14  ;;  %v898_v36 = vmax.f32 %v856_v29, 0.0 }
 0x2a0   :  { %v858_v33 = vpop.f32.mrf.mxu0  ;;  %1815 = vmatmul.mubr.bf16.gmra.mxu1 %v915_v27 }
 0x2a1   :  { %v859_v34 = vadd.f32 %v2294_v53, %v858_v33  ;;  %v901_v35 = vmax.f32 %v867_v30, 0.0  ;;  %v2334_v53 = vld [vmem:[%s2416_s8] ss:$0 sm:$0xff] }
 0x2a3   :  { %v899_v37 = vmax.f32 %v859_v34, 0.0  ;;  %v917_v32 = vpack.c.bf16 %v901_v35, %v900_v23 }
 0x2a5   :  { %v916_v38 = vpack.c.bf16 %v899_v37, %v898_v36 }
 0x2a7   :  { %1818 = vmatprep.mubr.bf16.mxu1 %v916_v38 }
 0x2a8   :  { %1819 = vmatmul.mubr.bf16.gmra.mxu1 %v917_v32 }
 0x330   :  { %v1792_v40 = vpop.f32.mrf.mxu1 }
 0x331   :  { %v1032_v46 = vadd.f32 %v1792_v40, %v2334_v53 }
 0x332   :  { %v1023_v42 = vpop.f32.mrf.mxu1 }
 0x333   :  { %v1024_v44 = vadd.f32 %v2334_v53, %v1023_v42  ;;  %v1152_v1 = vmax.f32 %v1032_v46, 0.0 }
 0x334   :  { %v1793_v43 = vpop.f32.mrf.mxu1 }
 0x335   :  { %v1035_v45 = vadd.f32 %v1793_v43, %v2334_v53  ;;  %v1150_v41 = vmax.f32 %v1024_v44, 0.0 }
 0x336   :  { %v1026_v47 = vpop.f32.mrf.mxu1 }
 0x337   :  { %v1027_v60 = vadd.f32 %v2334_v53, %v1026_v47  ;;  %v1153_v48 = vmax.f32 %v1035_v45, 0.0 }
 0x338   :  { %v1796_v49 = vpop.f32.mrf.mxu1 }
 0x339   :  { %v1151_v50 = vmax.f32 %v1027_v60, 0.0  ;;  %v1183_v54 = vpack.c.bf16 %v1153_v48, %v1152_v1  ;;  %v1048_v58 = vadd.f32 %v1796_v49, %v2334_v53 }
 0x33a   :  { %v1039_v51 = vpop.f32.mrf.mxu1 }
 0x33b   :  { %v1182_v52 = vpack.c.bf16 %v1151_v50, %v1150_v41  ;;  %v1040_v56 = vadd.f32 %v2334_v53, %v1039_v51  ;;  %v1156_v3 = vmax.f32 %v1048_v58, 0.0 }
 0x33c   :  { %v1797_v55 = vpop.f32.mrf.mxu1 }
 0x33d   :  { %v1051_v57 = vadd.f32 %v1797_v55, %v2334_v53  ;;  %1838 = vmatprep.mubr.bf16.mxu0 %v1182_v52  ;;  %v1154_v0 = vmax.f32 %v1040_v56, 0.0 }
 0x33e   :  { %v1042_v59 = vpop.f32.mrf.mxu1  ;;  %1839 = vmatmul.mubr.bf16.vlgmr.msra.gmra.mxu0 %v1183_v54 }
 0x33f   :  { %v1043_v61 = vadd.f32 %v2334_v53, %v1042_v59  ;;  %v1157_v62 = vmax.f32 %v1051_v57, 0.0 }
 0x340   :  { %v1800_v63 = vpop.f32.mrf.mxu1 }
 0x341   :  { %v1155_v2 = vmax.f32 %v1043_v61, 0.0  ;;  %v1185_v7 = vpack.c.bf16 %v1157_v62, %v1156_v3  ;;  %v1064_v11 = vadd.f32 %v1800_v63, %v2334_v53 }
 0x342   :  { %v1055_v4 = vpop.f32.mrf.mxu1 }
 0x343   :  { %v1184_v6 = vpack.c.bf16 %v1155_v2, %v1154_v0  ;;  %v1056_v9 = vadd.f32 %v2334_v53, %v1055_v4  ;;  %v1160_v19 = vmax.f32 %v1064_v11, 0.0 }
 0x344   :  { %v1801_v8 = vpop.f32.mrf.mxu1 }
 0x345   :  { %v1067_v10 = vadd.f32 %v1801_v8, %v2334_v53  ;;  %1842 = vmatprep.mubr.bf16.mxu0 %v1184_v6  ;;  %v1158_v17 = vmax.f32 %v1056_v9, 0.0 }
 0x346   :  { %v1058_v12 = vpop.f32.mrf.mxu1  ;;  %1843 = vmatmul.mubr.bf16.gmra.mxu0 %v1185_v7 }
 0x347   :  { %v1059_v13 = vadd.f32 %v2334_v53, %v1058_v12  ;;  %v1161_v15 = vmax.f32 %v1067_v10, 0.0 }
 0x348   :  { %v1804_v16 = vpop.f32.mrf.mxu1 }
 0x349   :  { %v1159_v18 = vmax.f32 %v1059_v13, 0.0  ;;  %v1187_v22 = vpack.c.bf16 %v1161_v15, %v1160_v19  ;;  %v1080_v5 = vadd.f32 %v1804_v16, %v2334_v53 }
 0x34a   :  { %v1071_v20 = vpop.f32.mrf.mxu1 }
 0x34b   :  { %v1186_v21 = vpack.c.bf16 %v1159_v18, %v1158_v17  ;;  %v1072_v25 = vadd.f32 %v2334_v53, %v1071_v20  ;;  %v1164_v33 = vmax.f32 %v1080_v5, 0.0 }
 0x34c   :  { %v1805_v24 = vpop.f32.mrf.mxu1 }
 0x34d   :  { %v1083_v26 = vadd.f32 %v1805_v24, %v2334_v53  ;;  %1846 = vmatprep.mubr.bf16.mxu0 %v1186_v21  ;;  %v1162_v30 = vmax.f32 %v1072_v25, 0.0 }
 0x34e   :  { %v1074_v14 = vpop.f32.mrf.mxu1  ;;  %1847 = vmatmul.mubr.bf16.gmra.mxu0 %v1187_v22 }
 0x34f   :  { %v1075_v27 = vadd.f32 %v2334_v53, %v1074_v14  ;;  %v1165_v28 = vmax.f32 %v1083_v26, 0.0 }
 0x350   :  { %v1808_v29 = vpop.f32.mrf.mxu1 }
 0x351   :  { %v1163_v31 = vmax.f32 %v1075_v27, 0.0  ;;  %v1189_v36 = vpack.c.bf16 %v1165_v28, %v1164_v33  ;;  %v1096_v32 = vadd.f32 %v1808_v29, %v2334_v53  ;;  %v2371_v27 = vld [vmem:[%s2418_s10] ss:$0 sm:$0xff]  ;;  %s1931_s10 = smov [#allocation2]  }
 0x352   :  { %v1087_v34 = vpop.f32.mrf.mxu1  ;;  %s1467_s23 = sshll.u32 %s1931_s10, 4  ;;  %s1468_s23 = int_to_ptr.vmem [resolvable:$true] %s1467_s23 }
 0x353   :  { %v1188_v35 = vpack.c.bf16 %v1163_v31, %v1162_v30  ;;  %v1088_v23 = vadd.f32 %v2334_v53, %v1087_v34  ;;  %v1168_v46 = vmax.f32 %v1096_v32, 0.0  ;;  %s1909_s3 = scalar_lea.vmem %s1468_s23, 4096  ;;  %p1914_p1 = scmp.lt.s32.totalorder %s1468_s23, %s1468_s23 }
 0x354   :  { %v1809_v37 = vpop.f32.mrf.mxu1  ;;  %p1910_p0 = scmp.ne.s32.totalorder %s1468_s23, %s1909_s3  ;;  %p1915_p2 = scmp.lt.s32.totalorder %s1909_s3, %s1909_s3 }
 0x355   :  { %v1099_v38 = vadd.f32 %v1809_v37, %v2334_v53  ;;  %1850 = vmatprep.mubr.bf16.mxu0 %v1188_v35  ;;  %v1166_v44 = vmax.f32 %v1088_v23, 0.0 }
 0x356   :  { %v1090_v39 = vpop.f32.mrf.mxu1  ;;  %1851 = vmatmul.mubr.bf16.gmra.mxu0 %v1189_v36  ;;  %p1916_p3 = por %p1915_p2, %p1914_p1 }
 0x357   :  { %v1091_v40 = vadd.f32 %v2334_v53, %v1090_v39  ;;  %v1169_v42 = vmax.f32 %v1099_v38, 0.0 }
 0x358   :  { %v1812_v43 = vpop.f32.mrf.mxu1  ;;  %p1917_p4 = pnand %p1916_p3, %p1910_p0 }
 0x359   :  { %v1167_v45 = vmax.f32 %v1091_v40, 0.0  ;;  %v1191_v48 = vpack.c.bf16 %v1169_v42, %v1168_v46  ;;  %v1112_v1 = vadd.f32 %v1812_v43, %v2334_v53 }
 0x35a   :  { %v1103_v47 = vpop.f32.mrf.mxu1 }
 0x35b   :  { %v1190_v60 = vpack.c.bf16 %v1167_v45, %v1166_v44  ;;  %v1104_v41 = vadd.f32 %v2334_v53, %v1103_v47  ;;  %v1172_v58 = vmax.f32 %v1112_v1, 0.0 }
 0x35c   :  { %v1813_v49 = vpop.f32.mrf.mxu1 }
 0x35d   :  { %v1115_v50 = vadd.f32 %v1813_v49, %v2334_v53  ;;  %1854 = vmatprep.mubr.bf16.mxu0 %v1190_v60  ;;  %v1170_v56 = vmax.f32 %v1104_v41, 0.0 }
 0x35e   :  { %v1106_v51 = vpop.f32.mrf.mxu1  ;;  %1855 = vmatmul.mubr.bf16.gmra.mxu0 %v1191_v48 }
 0x35f   :  { %v1107_v52 = vadd.f32 %v2334_v53, %v1106_v51  ;;  %v1173_v54 = vmax.f32 %v1115_v50, 0.0 }
 0x360   :  { %v1816_v55 = vpop.f32.mrf.mxu1 }
 0x361   :  { %v1171_v57 = vmax.f32 %v1107_v52, 0.0  ;;  %v1193_v62 = vpack.c.bf16 %v1173_v54, %v1172_v58  ;;  %v1128_v3 = vadd.f32 %v1816_v55, %v2334_v53 }
 0x362   :  { %v1119_v59 = vpop.f32.mrf.mxu1 }
 0x363   :  { %v1192_v61 = vpack.c.bf16 %v1171_v57, %v1170_v56  ;;  %v1120_v0 = vadd.f32 %v2334_v53, %v1119_v59  ;;  %v1176_v11 = vmax.f32 %v1128_v3, 0.0 }
 0x364   :  { %v1817_v63 = vpop.f32.mrf.mxu1 }
 0x365   :  { %v1131_v2 = vadd.f32 %v1817_v63, %v2334_v53  ;;  %1858 = vmatprep.mubr.bf16.mxu0 %v1192_v61  ;;  %v1174_v9 = vmax.f32 %v1120_v0, 0.0 }
 0x366   :  { %v1122_v4 = vpop.f32.mrf.mxu1  ;;  %1859 = vmatmul.mubr.bf16.gmra.mxu0 %v1193_v62 }
 0x367   :  { %v1123_v6 = vadd.f32 %v2334_v53, %v1122_v4  ;;  %v1177_v7 = vmax.f32 %v1131_v2, 0.0 }
 0x368   :  { %v1820_v8 = vpop.f32.mrf.mxu1 }
 0x369   :  { %v1175_v10 = vmax.f32 %v1123_v6, 0.0  ;;  %v1195_v15 = vpack.c.bf16 %v1177_v7, %v1176_v11  ;;  %v1144_v19 = vadd.f32 %v1820_v8, %v2334_v53 }
 0x36a   :  { %v1135_v12 = vpop.f32.mrf.mxu1 }
 0x36b   :  { %v1194_v13 = vpack.c.bf16 %v1175_v10, %v1174_v9  ;;  %v1136_v17 = vadd.f32 %v2334_v53, %v1135_v12  ;;  %v1180_v26 = vmax.f32 %v1144_v19, 0.0 }
 0x36c   :  { %v1821_v16 = vpop.f32.mrf.mxu1 }
 0x36d   :  { %v1147_v18 = vadd.f32 %v1821_v16, %v2334_v53  ;;  %1862 = vmatprep.mubr.bf16.mxu0 %v1194_v13  ;;  %v1178_v24 = vmax.f32 %v1136_v17, 0.0 }
 0x36e   :  { %v1138_v20 = vpop.f32.mrf.mxu1  ;;  %1863 = vmatmul.mubr.bf16.gmra.mxu0 %v1195_v15 }
 0x36f   :  { %v1139_v21 = vadd.f32 %v2334_v53, %v1138_v20  ;;  %v1181_v22 = vmax.f32 %v1147_v18, 0.0 }
 0x371   :  { %v1179_v25 = vmax.f32 %v1139_v21, 0.0  ;;  %v1197_v14 = vpack.c.bf16 %v1181_v22, %v1180_v26 }
 0x373   :  { %v1196_v5 = vpack.c.bf16 %v1179_v25, %v1178_v24 }
 0x375   :  { %1866 = vmatprep.mubr.bf16.mxu0 %v1196_v5 }
 0x376   :  { %1867 = vmatmul.mubr.bf16.gmra.mxu0 %v1197_v14 }
 0x3fe   :  { %v1840_v28 = vpop.f32.mrf.mxu0 }
 0x3ff   :  { %v1312_v29 = vadd.f32 %v1840_v28, %v2371_v27 }
 0x400   :  { %v1303_v30 = vpop.f32.mrf.mxu0 }
 0x401   :  { %1432 = vst [vmem:[#allocation2 + $0x10] sm:$0xff] %v1312_v29  ;;  %v1304_v53 = vadd.f32 %v2371_v27, %v1303_v30 }
 0x402   :  { %v1841_v31 = vpop.f32.mrf.mxu0 }
 0x403   :  { %1430 = vst [vmem:[#allocation2] sm:$0xff] %v1304_v53  ;;  %v1315_v33 = vadd.f32 %v1841_v31, %v2371_v27 }
 0x404   :  { %v1306_v34 = vpop.f32.mrf.mxu0 }
 0x405   :  { %1433 = vst [vmem:[#allocation2 + $0x18] sm:$0xff] %v1315_v33  ;;  %v1307_v35 = vadd.f32 %v2371_v27, %v1306_v34 }
 0x406   :  { %v1844_v36 = vpop.f32.mrf.mxu0 }
 0x407   :  { %1431 = vst [vmem:[#allocation2 + $0x8] sm:$0xff] %v1307_v35  ;;  %v1328_v37 = vadd.f32 %v1844_v36, %v2371_v27 }
 0x408   :  { %v1319_v23 = vpop.f32.mrf.mxu0 }
 0x409   :  { %1436 = vst [vmem:[#allocation2 + $0x30] sm:$0xff] %v1328_v37  ;;  %v1320_v38 = vadd.f32 %v2371_v27, %v1319_v23 }
 0x40a   :  { %v1845_v32 = vpop.f32.mrf.mxu0 }
 0x40b   :  { %1434 = vst [vmem:[#allocation2 + $0x20] sm:$0xff] %v1320_v38  ;;  %v1331_v39 = vadd.f32 %v1845_v32, %v2371_v27 }
 0x40c   :  { %v1322_v40 = vpop.f32.mrf.mxu0 }
 0x40d   :  { %1437 = vst [vmem:[#allocation2 + $0x38] sm:$0xff] %v1331_v39  ;;  %v1323_v42 = vadd.f32 %v2371_v27, %v1322_v40 }
 0x40e   :  { %v1848_v43 = vpop.f32.mrf.mxu0 }
 0x40f   :  { %1435 = vst [vmem:[#allocation2 + $0x28] sm:$0xff] %v1323_v42  ;;  %v1344_v44 = vadd.f32 %v1848_v43, %v2371_v27 }
 0x410   :  { %v1335_v45 = vpop.f32.mrf.mxu0 }
 0x411   :  { %1440 = vst [vmem:[#allocation2 + $0x50] sm:$0xff] %v1344_v44  ;;  %v1336_v46 = vadd.f32 %v2371_v27, %v1335_v45 }
 0x412   :  { %v1849_v47 = vpop.f32.mrf.mxu0 }
 0x413   :  { %1438 = vst [vmem:[#allocation2 + $0x40] sm:$0xff] %v1336_v46  ;;  %v1347_v60 = vadd.f32 %v1849_v47, %v2371_v27 }
 0x414   :  { %v1338_v48 = vpop.f32.mrf.mxu0 }
 0x415   :  { %1441 = vst [vmem:[#allocation2 + $0x58] sm:$0xff] %v1347_v60  ;;  %v1339_v49 = vadd.f32 %v2371_v27, %v1338_v48 }
 0x416   :  { %v1852_v41 = vpop.f32.mrf.mxu0 }
 0x417   :  { %1439 = vst [vmem:[#allocation2 + $0x48] sm:$0xff] %v1339_v49  ;;  %v1360_v50 = vadd.f32 %v1852_v41, %v2371_v27 }
 0x418   :  { %v1351_v1 = vpop.f32.mrf.mxu0 }
 0x419   :  { %1444 = vst [vmem:[#allocation2 + $0x70] sm:$0xff] %v1360_v50  ;;  %v1352_v51 = vadd.f32 %v2371_v27, %v1351_v1 }
 0x41a   :  { %v1853_v52 = vpop.f32.mrf.mxu0 }
 0x41b   :  { %1442 = vst [vmem:[#allocation2 + $0x60] sm:$0xff] %v1352_v51  ;;  %v1363_v54 = vadd.f32 %v1853_v52, %v2371_v27 }
 0x41c   :  { %v1354_v55 = vpop.f32.mrf.mxu0 }
 0x41d   :  { %1445 = vst [vmem:[#allocation2 + $0x78] sm:$0xff] %v1363_v54  ;;  %v1355_v56 = vadd.f32 %v2371_v27, %v1354_v55 }
 0x41e   :  { %v1856_v57 = vpop.f32.mrf.mxu0 }
 0x41f   :  { %1443 = vst [vmem:[#allocation2 + $0x68] sm:$0xff] %v1355_v56  ;;  %v1376_v58 = vadd.f32 %v1856_v57, %v2371_v27 }
 0x420   :  { %v1367_v59 = vpop.f32.mrf.mxu0 }
 0x421   :  { %1448 = vst [vmem:[#allocation2 + $0x90] sm:$0xff] %v1376_v58  ;;  %v1368_v61 = vadd.f32 %v2371_v27, %v1367_v59 }
 0x422   :  { %v1857_v62 = vpop.f32.mrf.mxu0 }
 0x423   :  { %1446 = vst [vmem:[#allocation2 + $0x80] sm:$0xff] %v1368_v61  ;;  %v1379_v63 = vadd.f32 %v1857_v62, %v2371_v27 }
 0x424   :  { %v1370_v0 = vpop.f32.mrf.mxu0 }
 0x425   :  { %1449 = vst [vmem:[#allocation2 + $0x98] sm:$0xff] %v1379_v63  ;;  %v1371_v2 = vadd.f32 %v2371_v27, %v1370_v0 }
 0x426   :  { %v1860_v3 = vpop.f32.mrf.mxu0 }
 0x427   :  { %1447 = vst [vmem:[#allocation2 + $0x88] sm:$0xff] %v1371_v2  ;;  %v1392_v4 = vadd.f32 %v1860_v3, %v2371_v27 }
 0x428   :  { %v1383_v6 = vpop.f32.mrf.mxu0 }
 0x429   :  { %1452 = vst [vmem:[#allocation2 + $0xb0] sm:$0xff] %v1392_v4  ;;  %v1384_v7 = vadd.f32 %v2371_v27, %v1383_v6 }
 0x42a   :  { %v1861_v8 = vpop.f32.mrf.mxu0 }
 0x42b   :  { %1450 = vst [vmem:[#allocation2 + $0xa0] sm:$0xff] %v1384_v7  ;;  %v1395_v9 = vadd.f32 %v1861_v8, %v2371_v27 }
 0x42c   :  { %v1386_v10 = vpop.f32.mrf.mxu0 }
 0x42d   :  { %1453 = vst [vmem:[#allocation2 + $0xb8] sm:$0xff] %v1395_v9  ;;  %v1387_v11 = vadd.f32 %v2371_v27, %v1386_v10 }
 0x42e   :  { %v1864_v12 = vpop.f32.mrf.mxu0 }
 0x42f   :  { %1451 = vst [vmem:[#allocation2 + $0xa8] sm:$0xff] %v1387_v11  ;;  %v1408_v13 = vadd.f32 %v1864_v12, %v2371_v27 }
 0x430   :  { %v1399_v15 = vpop.f32.mrf.mxu0 }
 0x431   :  { %1456 = vst [vmem:[#allocation2 + $0xd0] sm:$0xff] %v1408_v13  ;;  %v1400_v16 = vadd.f32 %v2371_v27, %v1399_v15 }
 0x432   :  { %v1865_v17 = vpop.f32.mrf.mxu0 }
 0x433   :  { %1454 = vst [vmem:[#allocation2 + $0xc0] sm:$0xff] %v1400_v16  ;;  %v1411_v18 = vadd.f32 %v1865_v17, %v2371_v27 }
 0x434   :  { %v1402_v19 = vpop.f32.mrf.mxu0 }
 0x435   :  { %1457 = vst [vmem:[#allocation2 + $0xd8] sm:$0xff] %v1411_v18  ;;  %v1403_v20 = vadd.f32 %v2371_v27, %v1402_v19 }
 0x436   :  { %v1868_v21 = vpop.f32.mrf.mxu0 }
 0x437   :  { %1455 = vst [vmem:[#allocation2 + $0xc8] sm:$0xff] %v1403_v20  ;;  %v1424_v22 = vadd.f32 %v1868_v21, %v2371_v27 }
 0x438   :  { %v1415_v24 = vpop.f32.mrf.mxu0 }
 0x439   :  { %1460 = vst [vmem:[#allocation2 + $0xf0] sm:$0xff] %v1424_v22  ;;  %v1416_v25 = vadd.f32 %v2371_v27, %v1415_v24 }
 0x43a   :  { %v1869_v26 = vpop.f32.mrf.mxu0 }
 0x43b   :  { %1458 = vst [vmem:[#allocation2 + $0xe0] sm:$0xff] %v1416_v25  ;;  %v1427_v5 = vadd.f32 %v1869_v26, %v2371_v27 }
 0x43c   :  { %v1418_v14 = vpop.f32.mrf.mxu0 }
 0x43d   :  { %1461 = vst [vmem:[#allocation2 + $0xf8] sm:$0xff] %v1427_v5  ;;  %v1419_v28 = vadd.f32 %v2371_v27, %v1418_v14 }
 0x43f   :  { %1459 = vst [vmem:[#allocation2 + $0xe8] sm:$0xff] %v1419_v28 }
 0x440   :  { %1920 = shalt.err (!%p1917_p4)
}
 0x441   :  { %s1932_s24 = smov 128   ;;  %s1933_s25 = smov 8  }
 0x442   :  { %1473 = dma.vmem_to_hbm [thread:$0]  %s1468_s23, 4096, %s2419_s11, [#allocation3], %s1932_s24, %s1932_s24, %s1933_s25  }
 0x443   :  { %1929 = dma.done.wait [#allocation3], 4096  }
 0x444   :  { %1930 = vsyncadd [#allocation3], 4294963200 }
 0x445   :  { %1477 = vsyncpa [#allocation3], 1 }

</bundles_post_ra>
